<compile_context>
chip_gen: v6e
topology: v6e:2x2x1
jax: 0.10.0
libtpu: 0.0.40
codegen_flags: <defaults>
</compile_context>

<pallas_src>
import functools

import jax
import jax.numpy as jnp
from jax.experimental import pallas as pl
from jax.experimental.pallas import tpu as pltpu

IN_F = 5          # real input features
OUT_F = 2         # real output features
HID = 256
OUT_PAD = 8       # lane-padded output width stored by the kernel
NEG_SLOPE = 0.01  # F.leaky_relu default
DEFAULT_TILE_B = 2048


def _leaky_relu(x):
    # max(x, 0.01*x): one vmul + one vmax.
    return jnp.maximum(x, NEG_SLOPE * x)


def _round_up(n, m):
    return ((n + m - 1) // m) * m


def mlp_kernel(x_ref, w1_ref, b1_ref, w2_ref, b2_ref, w3_ref, b3_ref, o_ref,
               *, bf16_act):
    # x_ref : (TILE_B, IN_F)     f32  (cast to bf16 in-kernel)
    # w1_ref: (IN_F, HID)        bf16   b1_ref: (1, HID)     f32
    # w2_ref: (HID, HID)         bf16   b2_ref: (1, HID)     f32
    # w3_ref: (HID, OUT_PAD)     bf16   b3_ref: (1, OUT_PAD) f32
    # o_ref : (TILE_B, OUT_PAD)  f32
    # Dropout (p=0.025) is identity in inference mode.
    x = x_ref[...].astype(jnp.bfloat16)

    h1 = jnp.dot(x, w1_ref[...], preferred_element_type=jnp.float32) + b1_ref[...]
    if bf16_act:
        h1 = h1.astype(jnp.bfloat16)
    h1 = _leaky_relu(h1)

    h2 = jnp.dot(h1.astype(jnp.bfloat16), w2_ref[...],
                 preferred_element_type=jnp.float32) + b2_ref[...]
    if bf16_act:
        h2 = h2.astype(jnp.bfloat16)
    h2 = _leaky_relu(h2)

    out = jnp.dot(h2.astype(jnp.bfloat16), w3_ref[...],
                  preferred_element_type=jnp.float32) + b3_ref[...]
    o_ref[...] = out.astype(o_ref.dtype)


def prepare_params(params):
    """One-time padding / casting of weights (hoisted out of the forward)."""
    w1, b1, w2, b2, w3, b3 = params
    w1_p = w1.astype(jnp.bfloat16)                      # (5, 256) -- no K pad
    w2_p = w2.astype(jnp.bfloat16)                      # (256, 256)
    w3_p = jnp.zeros((HID, OUT_PAD), jnp.bfloat16).at[:, :OUT_F].set(
        w3.astype(jnp.bfloat16))                        # (256, 8)
    b1_p = b1.reshape(1, HID).astype(jnp.float32)
    b2_p = b2.reshape(1, HID).astype(jnp.float32)
    b3_p = jnp.zeros((1, OUT_PAD), jnp.float32).at[0, :OUT_F].set(
        b3.astype(jnp.float32))
    return (w1_p, b1_p, w2_p, b2_p, w3_p, b3_p)


def _default_bf16_act():
    # v6e/v7x VPUs are bf16-capable; keep f32 activations on older parts.
    try:
        kind = jax.devices()[0].device_kind.lower()
    except Exception:
        return True
    return not any(tag in kind for tag in ("v2", "v3", "v4", "v5"))


def _choose_tile_b(batch, tile_b):
    """Batch tile: multiple of 16, >=2 grid steps for moderate/large batches."""
    b16 = _round_up(batch, 16)
    if b16 <= 64:
        return b16
    half = _round_up(pl.cdiv(batch, 2), 16)   # ensure >= 2 steps (v7x megacore)
    return max(16, min(_round_up(tile_b, 16), half))


def _vmem_limit_bytes(tile_b):
    # x + out blocks double-buffered (narrow blocks pad to 128 lanes in VMEM)
    # + h1/h2 f32 and bf16 temps; weights are a few hundred KiB.
    per_row = 2 * 512 + 2 * 512 + HID * (2 * 4 + 2 * 2)
    est = tile_b * per_row + (1 << 20)
    return int(min(100 * (1 << 20), max(32 * (1 << 20), 2 * est)))


def mlp_forward(x, prepared, *, tile_b=DEFAULT_TILE_B, bf16_act=None):
    """x: (B, 5) float32. Returns (B, 2) float32."""
    w1_p, b1_p, w2_p, b2_p, w3_p, b3_p = prepared
    B = x.shape[0]
    if bf16_act is None:
        bf16_act = _default_bf16_act()

    tile = _choose_tile_b(B, tile_b)
    grid = (pl.cdiv(B, tile),)   # trailing partial block is masked by Pallas

    kernel = functools.partial(mlp_kernel, bf16_act=bf16_act)
    resident = lambda shape: pl.BlockSpec(shape, lambda i: (0, 0))

    out_p = pl.pallas_call(
        kernel,
        out_shape=jax.ShapeDtypeStruct((B, OUT_PAD), jnp.float32),
        grid=grid,
        in_specs=[
            pl.BlockSpec((tile, IN_F), lambda i: (i, 0)),   # x tile (B, 5)
            resident((IN_F, HID)),                          # w1
            resident((1, HID)),                             # b1
            resident((HID, HID)),                           # w2
            resident((1, HID)),                             # b2
            resident((HID, OUT_PAD)),                       # w3
            resident((1, OUT_PAD)),                         # b3
        ],
        out_specs=pl.BlockSpec((tile, OUT_PAD), lambda i: (i, 0)),
        compiler_params=pltpu.CompilerParams(
            dimension_semantics=("parallel",),
            vmem_limit_bytes=_vmem_limit_bytes(tile)),
    )(x.astype(jnp.float32), w1_p, b1_p, w2_p, b2_p, w3_p, b3_p)

    return out_p[:, :OUT_F]


def init_params(key):
    """Deterministic init mimicking nn.Linear (uniform +-1/sqrt(fan_in))."""
    ks = jax.random.split(key, 6)

    def linear(kw, kb, fan_in, fan_out):
        bound = 1.0 / jnp.sqrt(fan_in)
        w = jax.random.uniform(kw, (fan_in, fan_out), jnp.float32, -bound, bound)
        b = jax.random.uniform(kb, (fan_out,), jnp.float32, -bound, bound)
        return w, b

    w1, b1 = linear(ks[0], ks[1], IN_F, HID)
    w2, b2 = linear(ks[2], ks[3], HID, HID)
    w3, b3 = linear(ks[4], ks[5], HID, OUT_F)
    return (w1, b1, w2, b2, w3, b3)


def reference_forward(x, params):
    w1, b1, w2, b2, w3, b3 = params
    h1 = _leaky_relu(x @ w1 + b1)
    h2 = _leaky_relu(h1 @ w2 + b2)
    return h2 @ w3 + b3


if __name__ == "__main__":
    key = jax.random.PRNGKey(0)
    kx, kp, kx2 = jax.random.split(key, 3)
    params = init_params(kp)
    prepared = prepare_params(params)

    # Small batch (single block).
    B = 8
    x = jax.random.normal(kx, (B, IN_F), jnp.float32)
    out = mlp_forward(x, prepared)
    jax.block_until_ready(out)
    ref = reference_forward(x, params)
    assert out.shape == (B, OUT_F), out.shape
    assert jnp.allclose(out, ref, atol=3e-2, rtol=3e-2), \
        "mismatch vs reference (small)"

    # Larger batch: multi-step grid, resident weights, masked trailing block.
    B2 = 1000
    x2 = jax.random.normal(kx2, (B2, IN_F), jnp.float32)
    out2 = mlp_forward(x2, prepared)
    jax.block_until_ready(out2)
    ref2 = reference_forward(x2, params)
    assert out2.shape == (B2, OUT_F), out2.shape
    assert jnp.allclose(out2, ref2, atol=3e-2, rtol=3e-2), \
        "mismatch vs reference (tiled)"

    print("KERNEL_OK")
</pallas_src>

<mosaic_0001>
module attributes {stable_mosaic.version = 11 : i64} {
  func.func @mlp_kernel(%arg0: i32, %arg1: memref<16x5xf32, #tpu.memory_space<vmem>>, %arg2: memref<5x256xbf16, #tpu.memory_space<vmem>>, %arg3: memref<1x256xf32, #tpu.memory_space<vmem>>, %arg4: memref<256x256xbf16, #tpu.memory_space<vmem>>, %arg5: memref<1x256xf32, #tpu.memory_space<vmem>>, %arg6: memref<256x8xbf16, #tpu.memory_space<vmem>>, %arg7: memref<1x8xf32, #tpu.memory_space<vmem>>, %arg8: memref<16x8xf32, #tpu.memory_space<vmem>>) attributes {dimension_semantics = [#tpu.dimension_semantics<parallel>], iteration_bounds = array<i64: 1>, scalar_prefetch = 0 : i64, scratch_operands = 0 : i64, tpu.core_type = #tpu.core_type<tc>, window_params = [{transform_indices = @transform_0, window_bounds = array<i64: 16, 5>}, {pipeline_mode = #tpu.pipeline_mode<synchronous>, transform_indices = @transform_1, window_bounds = array<i64: 5, 256>}, {pipeline_mode = #tpu.pipeline_mode<synchronous>, transform_indices = @transform_2, window_bounds = array<i64: 1, 256>}, {pipeline_mode = #tpu.pipeline_mode<synchronous>, transform_indices = @transform_3, window_bounds = array<i64: 256, 256>}, {pipeline_mode = #tpu.pipeline_mode<synchronous>, transform_indices = @transform_4, window_bounds = array<i64: 1, 256>}, {pipeline_mode = #tpu.pipeline_mode<synchronous>, transform_indices = @transform_5, window_bounds = array<i64: 256, 8>}, {pipeline_mode = #tpu.pipeline_mode<synchronous>, transform_indices = @transform_6, window_bounds = array<i64: 1, 8>}, {transform_indices = @transform_7, window_bounds = array<i64: 16, 8>}]} {
    %c0 = arith.constant 0 : index
    %c0_0 = arith.constant 0 : index
    %0 = vector.load %arg1[%c0, %c0_0] : memref<16x5xf32, #tpu.memory_space<vmem>>, vector<16x5xf32>
    %1 = arith.truncf %0 : vector<16x5xf32> to vector<16x5xbf16>
    %c0_1 = arith.constant 0 : index
    %c0_2 = arith.constant 0 : index
    %2 = vector.load %arg2[%c0_1, %c0_2] : memref<5x256xbf16, #tpu.memory_space<vmem>>, vector<5x256xbf16>
    %cst = arith.constant dense<0.000000e+00> : vector<16x256xf32>
    %3 = tpu.matmul %1, %2, %cst {dimension_numbers = #tpu.dot_dimension_numbers<[1], [0], [0], [1], [0, 0, 1, 1], [], []>} : vector<16x5xbf16>, vector<5x256xbf16>, vector<16x256xf32> -> vector<16x256xf32>
    %c0_3 = arith.constant 0 : index
    %c0_4 = arith.constant 0 : index
    %4 = vector.load %arg3[%c0_3, %c0_4] : memref<1x256xf32, #tpu.memory_space<vmem>>, vector<1x256xf32>
    %5 = vector.broadcast %4 : vector<1x256xf32> to vector<16x256xf32>
    %6 = arith.addf %3, %5 : vector<16x256xf32>
    %7 = arith.truncf %6 : vector<16x256xf32> to vector<16x256xbf16>
    %cst_5 = arith.constant 1.000980e-02 : bf16
    %8 = vector.broadcast %cst_5 : bf16 to vector<16x256xbf16>
    %9 = arith.mulf %8, %7 : vector<16x256xbf16>
    %10 = arith.maximumf %7, %9 : vector<16x256xbf16>
    %c0_6 = arith.constant 0 : index
    %c0_7 = arith.constant 0 : index
    %11 = vector.load %arg4[%c0_6, %c0_7] : memref<256x256xbf16, #tpu.memory_space<vmem>>, vector<256x256xbf16>
    %cst_8 = arith.constant dense<0.000000e+00> : vector<16x256xf32>
    %12 = tpu.matmul %10, %11, %cst_8 {dimension_numbers = #tpu.dot_dimension_numbers<[1], [0], [0], [1], [0, 0, 1, 1], [], []>} : vector<16x256xbf16>, vector<256x256xbf16>, vector<16x256xf32> -> vector<16x256xf32>
    %c0_9 = arith.constant 0 : index
    %c0_10 = arith.constant 0 : index
    %13 = vector.load %arg5[%c0_9, %c0_10] : memref<1x256xf32, #tpu.memory_space<vmem>>, vector<1x256xf32>
    %14 = vector.broadcast %13 : vector<1x256xf32> to vector<16x256xf32>
    %15 = arith.addf %12, %14 : vector<16x256xf32>
    %16 = arith.truncf %15 : vector<16x256xf32> to vector<16x256xbf16>
    %cst_11 = arith.constant 1.000980e-02 : bf16
    %17 = vector.broadcast %cst_11 : bf16 to vector<16x256xbf16>
    %18 = arith.mulf %17, %16 : vector<16x256xbf16>
    %19 = arith.maximumf %16, %18 : vector<16x256xbf16>
    %c0_12 = arith.constant 0 : index
    %c0_13 = arith.constant 0 : index
    %20 = vector.load %arg6[%c0_12, %c0_13] : memref<256x8xbf16, #tpu.memory_space<vmem>>, vector<256x8xbf16>
    %cst_14 = arith.constant dense<0.000000e+00> : vector<16x8xf32>
    %21 = tpu.matmul %19, %20, %cst_14 {dimension_numbers = #tpu.dot_dimension_numbers<[1], [0], [0], [1], [0, 0, 1, 1], [], []>} : vector<16x256xbf16>, vector<256x8xbf16>, vector<16x8xf32> -> vector<16x8xf32>
    %c0_15 = arith.constant 0 : index
    %c0_16 = arith.constant 0 : index
    %22 = vector.load %arg7[%c0_15, %c0_16] : memref<1x8xf32, #tpu.memory_space<vmem>>, vector<1x8xf32>
    %23 = vector.broadcast %22 : vector<1x8xf32> to vector<16x8xf32>
    %24 = arith.addf %21, %23 : vector<16x8xf32>
    %c0_17 = arith.constant 0 : index
    %c0_18 = arith.constant 0 : index
    %25 = vector.load %arg8[%c0_17, %c0_18] : memref<16x8xf32, #tpu.memory_space<vmem>>, vector<16x8xf32>
    tpu.vector_store %arg8[%c0_17, %c0_18], %24 {strides = array<i32>} : memref<16x8xf32, #tpu.memory_space<vmem>>, vector<16x8xf32>,
    return
  }
  func.func @transform_0(%arg0: i32) -> (i32, i32) {
    %c0_i32 = arith.constant 0 : i32
    %c0_i32_0 = arith.constant 0 : i32
    return %arg0, %c0_i32 : i32, i32
  }
  func.func @transform_1(%arg0: i32) -> (i32, i32) {
    %c0_i32 = arith.constant 0 : i32
    %c0_i32_0 = arith.constant 0 : i32
    %c0_i32_1 = arith.constant 0 : i32
    return %c0_i32, %c0_i32_0 : i32, i32
  }
  func.func @transform_2(%arg0: i32) -> (i32, i32) {
    %c0_i32 = arith.constant 0 : i32
    %c0_i32_0 = arith.constant 0 : i32
    %c0_i32_1 = arith.constant 0 : i32
    return %c0_i32, %c0_i32_0 : i32, i32
  }
  func.func @transform_3(%arg0: i32) -> (i32, i32) {
    %c0_i32 = arith.constant 0 : i32
    %c0_i32_0 = arith.constant 0 : i32
    %c0_i32_1 = arith.constant 0 : i32
    return %c0_i32, %c0_i32_0 : i32, i32
  }
  func.func @transform_4(%arg0: i32) -> (i32, i32) {
    %c0_i32 = arith.constant 0 : i32
    %c0_i32_0 = arith.constant 0 : i32
    %c0_i32_1 = arith.constant 0 : i32
    return %c0_i32, %c0_i32_0 : i32, i32
  }
  func.func @transform_5(%arg0: i32) -> (i32, i32) {
    %c0_i32 = arith.constant 0 : i32
    %c0_i32_0 = arith.constant 0 : i32
    %c0_i32_1 = arith.constant 0 : i32
    return %c0_i32, %c0_i32_0 : i32, i32
  }
  func.func @transform_6(%arg0: i32) -> (i32, i32) {
    %c0_i32 = arith.constant 0 : i32
    %c0_i32_0 = arith.constant 0 : i32
    %c0_i32_1 = arith.constant 0 : i32
    return %c0_i32, %c0_i32_0 : i32, i32
  }
  func.func @transform_7(%arg0: i32) -> (i32, i32) {
    %c0_i32 = arith.constant 0 : i32
    %c0_i32_0 = arith.constant 0 : i32
    return %arg0, %c0_i32 : i32, i32
  }
}

</mosaic_0001>

<bundles_post_ra>
// kernel: tpu_custom_call.1
= control target key start
LH: loop header
LB: loop body
LE: loop exit
PB: predicated region body
PF: predicated region fallthrough
CT: control target
= control target key end

     0   :  { %12 = vsyncpa [#allocation3], 0  ;;  %s890_s0 = inlined_call_operand.vmem [shape: f32[8,5], index: 0, kind: input, shape index: {}]   ;;  %s891_s1 = inlined_call_operand.vmem [shape: bf16[5,256], index: 1, kind: input, shape index: {}]   ;;  %s892_s2 = inlined_call_operand.vmem [shape: f32[1,256], index: 2, kind: input, shape index: {}]   ;;  %s893_s3 = inlined_call_operand.hbm [shape: bf16[256,256], index: 3, kind: input, shape index: {}]   ;;  %s894_s4 = inlined_call_operand.vmem [shape: f32[1,256], index: 4, kind: input, shape index: {}]   ;;  %s895_s5 = inlined_call_operand.vmem [shape: bf16[256,8], index: 5, kind: input, shape index: {}]   ;;  %s896_s6 = inlined_call_operand.vmem [shape: f32[1,8], index: 6, kind: input, shape index: {}]   ;;  %s897_s7 = inlined_call_operand.hbm [shape: f32[8,8], index: 7, kind: output, shape index: {}]  }
   0x1   :  { %13 = vsyncpa [#allocation4], 0  ;;  %s766_s24 = smov [#allocation2]  }
   0x2   :  { %s25_s25 = sshll.u32 %s766_s24, 4  ;;  %s26_s25 = int_to_ptr.vmem [resolvable:$true] %s25_s25 }
   0x3   :  { %s730_s26 = scalar_lea.vmem %s26_s25, 4096  ;;  %p735_p1 = scmp.lt.s32.totalorder %s26_s25, %s26_s25 }
   0x4   :  { %p731_p0 = scmp.ne.s32.totalorder %s26_s25, %s730_s26  ;;  %p736_p2 = scmp.lt.s32.totalorder %s730_s26, %s730_s26 }
   0x6   :  { %p737_p3 = por %p736_p2, %p735_p1 }
   0x8   :  { %p738_p4 = pnand %p737_p3, %p731_p0 }
   0xa   :  { %741 = shalt.err (!%p738_p4)
}
   0xb   :  { %s767_s27 = smov 128   ;;  %s768_s28 = smov 8  }
   0xc   :  { %31 = dma.hbm_to_vmem [thread:$0]  %s893_s3, 4096, %s26_s25, [#allocation3], %s767_s27, %s767_s27, %s768_s28  }
   0xd   :  { %762 = dma.done.wait [#allocation3], 4096  }
   0xe   :  { %763 = vsyncadd [#allocation3], 4294963200  ;;  %vm68_vm0 = vcmask 1041408   ;;  %v769_v0 = vmov 0   ;;  %vm69_vm1 = vcmask 1042432   ;;  %v770_v1 = vmov 65535  }
   0xf   :  { %110 = vmatprep.mubr.bf16.mxu0 %v769_v0  ;;  %v70_v2 = vsel %vm68_vm0, 4294967295, %v770_v1  ;;  %v46_v3 = vld [vmem:[%s891_s1] sm:$0x77]  ;;  %v44_v6 = vld [vmem:[%s890_s0 + $0x8] sm:$0xff]  ;;  %v658_v9 = vld [vmem:[#allocation2 + $0x74] ss:$8 sps:$4 sm:$0xff]   ;;  %v49_v52 = vlaneseq }
  0x10   :  { %v71_v4 = vsel %vm69_vm1, %v70_v2, 0  ;;  %v43_v5 = vld [vmem:[%s890_s0] sm:$0xff]  ;;  %v577_v7 = vcombine.high %v46_v3, %v46_v3  ;;  %v576_v8 = vcombine.low %v46_v3, %v46_v3  ;;  %v660_v10 = vld [vmem:[#allocation2 + $0x70] ss:$8 sps:$4 sm:$0xff]   ;;  %331 = vmatprep.subr.bf16.mxu1 %v658_v9  ;;  %v664_v16 = vld [vmem:[#allocation2 + $0x54] ss:$8 sps:$4 sm:$0xff]  }
  0x11   :  { %v661_v13 = vld [vmem:[#allocation2 + $0x64] ss:$8 sps:$4 sm:$0xff]   ;;  %332 = vmatpush1.bf16.msra.mxu1 %v660_v10  ;;  %v663_v14 = vld [vmem:[#allocation2 + $0x60] ss:$8 sps:$4 sm:$0xff]   ;;  %v45_v15 = vpack.c.bf16 %v44_v6, %v43_v5  ;;  %vm64_vm2 = vcmask 39936   ;;  %v706_v44 = vld [vmem:[%s895_s5 + $0x78] sm:$0xff]  }
  0x12   :  { %v76_v11 = vand.u32 %v577_v7, %v71_v4  ;;  %v73_v12 = vand.u32 %v576_v8, %v71_v4  ;;  %333 = vmatprep.subr.bf16.mxu1 %v661_v13  ;;  %v666_v17 = vld [vmem:[#allocation2 + $0x50] ss:$8 sps:$4 sm:$0xff]   ;;  %v667_v18 = vld [vmem:[#allocation2 + $0x44] ss:$8 sps:$4 sm:$0xff]   ;;  %v669_v19 = vld [vmem:[#allocation2 + $0x40] ss:$8 sps:$4 sm:$0xff]  }
  0x13   :  { %v670_v20 = vld [vmem:[#allocation2 + $0x34] ss:$8 sps:$4 sm:$0xff]   ;;  %v672_v21 = vld [vmem:[#allocation2 + $0x30] ss:$8 sps:$4 sm:$0xff]   ;;  %v673_v22 = vld [vmem:[#allocation2 + $0x24] ss:$8 sps:$4 sm:$0xff]  }
  0x14   :  { %92 = vmatprep.subr.bf16.mxu0 %v76_v11  ;;  %v675_v23 = vld [vmem:[#allocation2 + $0x20] ss:$8 sps:$4 sm:$0xff]   ;;  %v676_v24 = vld [vmem:[#allocation2 + $0x14] ss:$8 sps:$4 sm:$0xff]   ;;  %v678_v25 = vld [vmem:[#allocation2 + $0x10] ss:$8 sps:$4 sm:$0xff]  }
  0x15   :  { %93 = vmatpush1.bf16.msra.mxu0 %v73_v12  ;;  %334 = vmatpush1.bf16.msra.mxu1 %v663_v14  ;;  %v679_v26 = vld [vmem:[#allocation2 + $0x4] ss:$8 sps:$4 sm:$0xff]   ;;  %v681_v27 = vld [vmem:[#allocation2] ss:$8 sps:$4 sm:$0xff]   ;;  %v682_v28 = vld [vmem:[#allocation2 + $0xf4] ss:$8 sps:$4 sm:$0xff]  }
  0x16   :  { %335 = vmatprep.subr.bf16.mxu1 %v664_v16  ;;  %v684_v29 = vld [vmem:[#allocation2 + $0xf0] ss:$8 sps:$4 sm:$0xff]   ;;  %v685_v30 = vld [vmem:[#allocation2 + $0xe4] ss:$8 sps:$4 sm:$0xff]   ;;  %v687_v31 = vld [vmem:[#allocation2 + $0xe0] ss:$8 sps:$4 sm:$0xff]   ;;  %628 = vmatprep.subr.bf16.mxu0 %v706_v44 }
  0x17   :  { %v688_v32 = vld [vmem:[#allocation2 + $0xd4] ss:$8 sps:$4 sm:$0xff]   ;;  %v690_v33 = vld [vmem:[#allocation2 + $0xd0] ss:$8 sps:$4 sm:$0xff]   ;;  %v691_v34 = vld [vmem:[#allocation2 + $0xc4] ss:$8 sps:$4 sm:$0xff]  }
  0x18   :  { %578 = vmatmul.mubr.msk.bf16.vlgmr.msra.gmra.mxu0 %vm64_vm2, %v45_v15  ;;  %v693_v35 = vld [vmem:[#allocation2 + $0xc0] ss:$8 sps:$4 sm:$0xff]   ;;  %v694_v36 = vld [vmem:[#allocation2 + $0xb4] ss:$8 sps:$4 sm:$0xff]   ;;  %v696_v37 = vld [vmem:[#allocation2 + $0xb0] ss:$8 sps:$4 sm:$0xff]  }
  0x19   :  { %336 = vmatpush1.bf16.msra.mxu1 %v666_v17  ;;  %v697_v38 = vld [vmem:[#allocation2 + $0xa4] ss:$8 sps:$4 sm:$0xff]   ;;  %v699_v39 = vld [vmem:[#allocation2 + $0xa0] ss:$8 sps:$4 sm:$0xff]   ;;  %v700_v40 = vld [vmem:[#allocation2 + $0x94] ss:$8 sps:$4 sm:$0xff]  }
  0x1a   :  { %337 = vmatprep.subr.bf16.mxu1 %v667_v18  ;;  %v702_v41 = vld [vmem:[#allocation2 + $0x90] ss:$8 sps:$4 sm:$0xff]   ;;  %v703_v42 = vld [vmem:[#allocation2 + $0x84] ss:$8 sps:$4 sm:$0xff]   ;;  %v705_v43 = vld [vmem:[#allocation2 + $0x80] ss:$8 sps:$4 sm:$0xff]  }
  0x1b   :  { %v707_v45 = vld [vmem:[%s895_s5 + $0x38] sm:$0xff]   ;;  %v708_v46 = vld [vmem:[%s895_s5 + $0x70] sm:$0xff]   ;;  %v710_v48 = vld [vmem:[%s895_s5 + $0x68] sm:$0xff]   ;;  %v50_v53 = vshrl.u32 %v49_v52, 7  ;;  %vm556_vm3 = vcmask 64512  }
  0x1c   :  { %629 = vmatpush3.bf16.msra.mxu0 %v707_v45  ;;  %v709_v47 = vld [vmem:[%s895_s5 + $0x30] sm:$0xff]   ;;  %v711_v49 = vld [vmem:[%s895_s5 + $0x28] sm:$0xff]   ;;  %v712_v50 = vld [vmem:[%s895_s5 + $0x60] sm:$0xff]  }
  0x1d   :  { %338 = vmatpush1.bf16.msra.mxu1 %v669_v19  ;;  %630 = vmatprep.subr.bf16.mxu0 %v708_v46  ;;  %v713_v51 = vld [vmem:[%s895_s5 + $0x20] sm:$0xff]   ;;  %v51_v54 = vsub.s32 0, %v50_v53  ;;  %v55_v56 = vsub.s32 1, %v50_v53  ;;  %v714_v9 = vld [vmem:[%s895_s5 + $0x58] sm:$0xff]   ;;  %v716_v11 = vld [vmem:[%s895_s5 + $0x50] sm:$0xff]  }
  0x1e   :  { %339 = vmatprep.subr.bf16.mxu1 %v670_v20  ;;  %v47_v55 = vld [vmem:[%s892_s2] sm:$0x3]  ;;  %v715_v10 = vld [vmem:[%s895_s5 + $0x18] sm:$0xff]   ;;  %v717_v12 = vld [vmem:[%s895_s5 + $0x10] sm:$0xff]  }
  0x1f   :  { %v52_v58 = vrot.slane %v47_v55, %v51_v54  ;;  %v56_v60 = vrot.slane %v47_v55, %v55_v56  ;;  %v718_v13 = vld [vmem:[%s895_s5 + $0x48] sm:$0xff]   ;;  %v720_v15 = vld [vmem:[%s895_s5 + $0x40] sm:$0xff]  }
  0x20   :  { %631 = vmatpush3.bf16.msra.mxu0 %v709_v47  ;;  %v719_v14 = vld [vmem:[%s895_s5 + $0x8] sm:$0xff]   ;;  %v721_v16 = vld [vmem:[%s895_s5] sm:$0xff]  }
  0x21   :  { %340 = vmatpush1.bf16.msra.mxu1 %v672_v21  ;;  %632 = vmatprep.subr.bf16.mxu0 %v710_v48  ;;  %v159_v17 = vld [vmem:[%s894_s4] sm:$0x3] }
  0x22   :  { %341 = vmatprep.subr.bf16.mxu1 %v673_v22  ;;  %v164_v19 = vrot.slane %v159_v17, %v51_v54  ;;  %v168_v21 = vrot.slane %v159_v17, %v55_v56 }
  0x24   :  { %633 = vmatpush3.bf16.msra.mxu0 %v711_v49 }
  0x25   :  { %342 = vmatpush1.bf16.msra.mxu1 %v675_v23  ;;  %634 = vmatprep.subr.bf16.mxu0 %v712_v50 }
  0x26   :  { %343 = vmatprep.subr.bf16.mxu1 %v676_v24 }
  0x28   :  { %635 = vmatpush3.bf16.msra.mxu0 %v713_v51 }
  0x29   :  { %344 = vmatpush1.bf16.msra.mxu1 %v678_v25  ;;  %636 = vmatprep.subr.bf16.mxu0 %v714_v9 }
  0x2a   :  { %345 = vmatprep.subr.bf16.mxu1 %v679_v26 }
  0x2c   :  { %637 = vmatpush3.bf16.msra.mxu0 %v715_v10 }
  0x2d   :  { %346 = vmatpush1.bf16.msra.mxu1 %v681_v27  ;;  %638 = vmatprep.subr.bf16.mxu0 %v716_v11 }
  0x2e   :  { %347 = vmatprep.subr.bf16.mxu1 %v682_v28 }
  0x30   :  { %639 = vmatpush3.bf16.msra.mxu0 %v717_v12 }
  0x31   :  { %348 = vmatpush2.bf16.msra.mxu1 %v684_v29  ;;  %640 = vmatprep.subr.bf16.mxu0 %v718_v13 }
  0x32   :  { %349 = vmatprep.subr.bf16.mxu1 %v685_v30 }
  0x34   :  { %641 = vmatpush3.bf16.msra.mxu0 %v719_v14 }
  0x35   :  { %350 = vmatpush2.bf16.msra.mxu1 %v687_v31  ;;  %642 = vmatprep.subr.bf16.mxu0 %v720_v15 }
  0x36   :  { %351 = vmatprep.subr.bf16.mxu1 %v688_v32 }
  0x38   :  { %643 = vmatpush3.bf16.msra.mxu0 %v721_v16 }
  0x39   :  { %352 = vmatpush2.bf16.msra.mxu1 %v690_v33 }
  0x3a   :  { %353 = vmatprep.subr.bf16.mxu1 %v691_v34 }
  0x3d   :  { %354 = vmatpush2.bf16.msra.mxu1 %v693_v35  ;;  %v611_v35 = vld [vmem:[%s896_s6] ss:$0 sm:$0xff] }
  0x3e   :  { %355 = vmatprep.subr.bf16.mxu1 %v694_v36 }
  0x41   :  { %356 = vmatpush2.bf16.msra.mxu1 %v696_v37 }
  0x42   :  { %357 = vmatprep.subr.bf16.mxu1 %v697_v38 }
  0x45   :  { %358 = vmatpush2.bf16.msra.mxu1 %v699_v39 }
  0x46   :  { %359 = vmatprep.subr.bf16.mxu1 %v700_v40 }
  0x49   :  { %360 = vmatpush2.bf16.msra.mxu1 %v702_v41 }
  0x4a   :  { %361 = vmatprep.subr.bf16.mxu1 %v703_v42 }
  0x4d   :  { %362 = vmatpush2.bf16.msra.mxu1 %v705_v43 }
  0xd8   :  { %v112_v57 = vpop.f32.mrf.mxu0 }
  0xd9   :  { %v113_v62 = vadd.f32 %v112_v57, %v52_v58 }
  0xda   :  { %v114_v59 = vpop.f32.mrf.mxu0 }
  0xdb   :  { %v115_v1 = vadd.f32 %v114_v59, %v56_v60 }
  0xdc   :  { %v116_v61 = vpop.f32.mrf.mxu0 }
  0xdd   :  { %v117_v63 = vadd.f32 %v116_v61, %v52_v58 }
  0xde   :  { %v118_v0 = vpop.f32.mrf.mxu0 }
  0xdf   :  { %v121_v2 = vpack.c.bf16 %v117_v63, %v113_v62  ;;  %v119_v3 = vadd.f32 %v118_v0, %v56_v60 }
  0xe1   :  { %v122_v4 = vpack.c.bf16 %v119_v3, %v115_v1  ;;  %v123_v5 = vmul.bf16 1009007652, %v121_v2 }
  0xe3   :  { %v124_v6 = vmul.bf16 1009007652, %v122_v4  ;;  %v125_v8 = vmax.bf16 %v123_v5, %v121_v2 }
  0xe5   :  { %v126_v7 = vmax.bf16 %v124_v6, %v122_v4 }
  0xe7   :  { %363 = vmatprep.mubr.bf16.mxu1 %v126_v7 }
  0xe8   :  { %364 = vmatmul.mubr.bf16.vlgmr.msra.gmra.mxu1 %v125_v8 }
 0x1a8   :  { %v365_v18 = vpop.f32.mrf.mxu1 }
 0x1a9   :  { %v366_v23 = vadd.f32 %v365_v18, %v164_v19 }
 0x1aa   :  { %v367_v20 = vpop.f32.mrf.mxu1 }
 0x1ab   :  { %v368_v26 = vadd.f32 %v367_v20, %v168_v21 }
 0x1ac   :  { %v369_v22 = vpop.f32.mrf.mxu1 }
 0x1ad   :  { %v370_v24 = vadd.f32 %v369_v22, %v164_v19 }
 0x1ae   :  { %v371_v25 = vpop.f32.mrf.mxu1 }
 0x1af   :  { %v374_v27 = vpack.c.bf16 %v370_v24, %v366_v23  ;;  %v372_v28 = vadd.f32 %v371_v25, %v168_v21 }
 0x1b1   :  { %v375_v29 = vpack.c.bf16 %v372_v28, %v368_v26  ;;  %v376_v30 = vmul.bf16 1009007652, %v374_v27 }
 0x1b3   :  { %v377_v31 = vmul.bf16 1009007652, %v375_v29  ;;  %v378_v33 = vmax.bf16 %v376_v30, %v374_v27 }
 0x1b5   :  { %v379_v32 = vmax.bf16 %v377_v31, %v375_v29 }
 0x1b7   :  { %547 = vmatprep.mubr.bf16.mxu0 %v379_v32 }
 0x1b8   :  { %548 = vmatmul.mubr.bf16.vlgmr.msra.gmra.mxu0 %v378_v33 }
 0x278   :  { %v644_v34 = vpop.f32.mrf.mxu0 }
 0x27a   :  { %v645_v36 = vpop.f32.mrf.mxu0 }
 0x27b   :  { %v646_v37 = vadd.f32 %v645_v36, %v644_v34 }
 0x27c   :  { %v647_v38 = vpop.f32.mrf.mxu0 }
 0x27d   :  { %v550_v39 = vadd.f32 %v646_v37, %v611_v35 }
 0x27e   :  { %v648_v40 = vpop.f32.mrf.mxu0 }
 0x27f   :  { %557 = vst.msk [vmem:[#allocation5] sm:$0xff] %vm556_vm3, %v550_v39  ;;  %v649_v41 = vadd.f32 %v648_v40, %v647_v38 }
 0x281   :  { %v553_v42 = vadd.f32 %v649_v41, %v611_v35 }
 0x283   :  { %558 = vst.msk [vmem:[#allocation5 + $0x8] sm:$0xff] %vm556_vm3, %v553_v42 }
 0x284   :  { %563 = vsyncadd [#allocation4], 128  ;;  %s771_s22 = smov [#allocation5]  }
 0x285   :  { %s564_s23 = sshll.u32 %s771_s22, 4  ;;  %s565_s23 = int_to_ptr.vmem [resolvable:$true] %s564_s23 }
 0x286   :  { %s742_s24 = scalar_lea.vmem %s565_s23, 128  ;;  %s746_s25 = scalar_lea.vmem %s565_s23, 256 }
 0x287   :  { %p743_p5 = scmp.ne.s32.totalorder %s565_s23, %s742_s24  ;;  %p747_p6 = scmp.lt.s32.totalorder %s565_s23, %s565_s23 }
 0x288   :  { %p748_p7 = scmp.lt.s32.totalorder %s746_s25, %s742_s24 }
 0x28a   :  { %p749_p8 = por %p748_p7, %p747_p6 }
 0x28c   :  { %p750_p9 = pnand %p749_p8, %p743_p5 }
 0x28e   :  { %753 = shalt.err (!%p750_p9)
}
 0x28f   :  { %570 = dma.vmem_to_hbm [thread:$0]  %s565_s23, 128, %s897_s7, [#allocation4], %s767_s27, %s767_s27, %s768_s28  }
 0x290   :  { %764 = dma.done.wait [#allocation4], 256  }
 0x291   :  { %765 = vsyncadd [#allocation4], 4294967040 }
 0x292   :  { %574 = vsyncpa [#allocation3], 1 }
 0x293   :  { %575 = vsyncpa [#allocation4], 1 }

</bundles_post_ra>
